<compile_context>
chip_gen: v6e
topology: v6e:2x2x1
jax: 0.10.0
libtpu: 0.0.40
codegen_flags: <defaults>
</compile_context>

<pallas_src>
import functools
import math

import jax
import jax.numpy as jnp
from jax.experimental import pallas as pl
from jax.experimental.pallas import tpu as pltpu


# ---------------------------------------------------------------------------
# in-kernel helpers
# ---------------------------------------------------------------------------
def _layer_norm(x, gamma, beta, eps=1e-5):
    # torch nn.LayerNorm semantics (biased variance, eps inside sqrt), in f32.
    mu = jnp.mean(x, axis=-1, keepdims=True)
    xc = x - mu
    var = jnp.mean(xc * xc, axis=-1, keepdims=True)
    inv = jax.lax.rsqrt(var + eps)
    return xc * inv * gamma + beta


def _erf_f32(x):
    # float32-accurate erf (Abramowitz & Stegun 7.1.26, |err| < 1.5e-7), built only
    # from exp/mul/add/where so it is guaranteed to lower in Mosaic.
    a1, a2, a3, a4, a5 = (0.254829592, -0.284496736, 1.421413741,
                          -1.453152027, 1.061405429)
    p = 0.3275911
    ax = jnp.abs(x)
    t = 1.0 / (1.0 + p * ax)
    poly = ((((a5 * t + a4) * t + a3) * t + a2) * t + a1) * t
    y = 1.0 - poly * jnp.exp(-ax * ax)
    return jnp.where(x >= 0, y, -y)


def _gelu_exact(x):
    # torch nn.GELU() default = exact erf-based GELU (kept for exact semantics).
    return 0.5 * x * (1.0 + _erf_f32(x * (1.0 / math.sqrt(2.0))))


# ---------------------------------------------------------------------------
# fused residual-attention-block kernel
# grid = (batch, query_tile, head); head axis is innermost (sequential).
# ---------------------------------------------------------------------------
def residual_block_kernel(xq_ref, xkv_ref,
                          ln1_g, ln1_b,
                          wq, bq, wk, wv, bv, wo, bo,
                          ln2_g, ln2_b,
                          w1, b1, w2, b2,
                          o_ref,
                          lnq_sc, lnkv_sc, k_sc, v_sc, acc_sc,
                          *, scale):
    qi = pl.program_id(1)
    h = pl.program_id(2)
    n_head = pl.num_programs(2)

    # ---- per-query-tile init: LayerNorm(x_q) cache + zero the attention acc ----
    @pl.when(h == 0)
    def _init_query_tile():
        xq = xq_ref[0].astype(jnp.float32)                       # (tq, D)
        lnq_sc[...] = _layer_norm(xq, ln1_g[...], ln1_b[...]).astype(jnp.bfloat16)
        acc_sc[...] = jnp.zeros_like(acc_sc)

    # ---- per-batch init: LayerNorm over the full kv sequence ----
    @pl.when((qi == 0) & (h == 0))
    def _init_kv_ln():
        xkv = xkv_ref[0].astype(jnp.float32)                     # (T, D)
        lnkv_sc[...] = _layer_norm(xkv, ln1_g[...], ln1_b[...]).astype(jnp.bfloat16)

    # ---- per-head K/V projection, cached across all query tiles of this batch ----
    @pl.when(qi == 0)
    def _project_kv():
        lnkv = lnkv_sc[...]                                      # (T, D) bf16
        k_sc[h] = jnp.dot(lnkv, wk[0],
                          preferred_element_type=jnp.float32).astype(jnp.bfloat16)
        v_sc[h] = (jnp.dot(lnkv, wv[0], preferred_element_type=jnp.float32)
                   + bv[0]).astype(jnp.bfloat16)

    # ---- this head's attention for this query tile ----
    # qk_scale == 1 => sqrt_qk_scale == 1; SDPA scale = 1/sqrt(head_dim).
    q = (jnp.dot(lnq_sc[...], wq[0], preferred_element_type=jnp.float32)
         + bq[0]) * scale                                        # (tq, hd) f32
    s = jax.lax.dot_general(q.astype(jnp.bfloat16), k_sc[h],
                            (((1,), (1,)), ((), ())),
                            preferred_element_type=jnp.float32)  # (tq, T)
    s = s - jnp.max(s, axis=-1, keepdims=True)                   # stable softmax
    e = jnp.exp(s)
    p = e * pl.reciprocal(jnp.sum(e, axis=-1, keepdims=True), approx=True)
    ctx = jnp.dot(p.astype(jnp.bfloat16), v_sc[h],
                  preferred_element_type=jnp.float32)            # (tq, hd)
    # accumulate this head's output-projection contribution (lane-dense (tq, D))
    acc_sc[...] += jnp.dot(ctx.astype(jnp.bfloat16), wo[0],
                           preferred_element_type=jnp.float32)

    # ---- after the last head: residual 1, MLP, residual 2, write output ----
    @pl.when(h == n_head - 1)
    def _finalize():
        x = xq_ref[0].astype(jnp.float32)                        # (tq, D)
        x1 = x + acc_sc[...] + bo[...]                           # residual 1
        ln2 = _layer_norm(x1, ln2_g[...], ln2_b[...]).astype(jnp.bfloat16)
        h1 = jnp.dot(ln2, w1[...], preferred_element_type=jnp.float32) + b1[...]
        g = _gelu_exact(h1).astype(jnp.bfloat16)
        mlp = jnp.dot(g, w2[...], preferred_element_type=jnp.float32) + b2[...]
        o_ref[0] = (x1 + mlp).astype(o_ref.dtype)                # residual 2


# ---------------------------------------------------------------------------
# wrapper
# ---------------------------------------------------------------------------
def _pick_tq(T):
    # largest "nice" query tile that divides T (multiples of 8 keep (8,128) tiling);
    # fall back to the full sequence when T has no such divisor.
    for cand in (512, 256, 128, 64, 32, 16, 8):
        if T >= cand and T % cand == 0:
            return cand
    return T


def residual_attention_block(x, params, n_head, x_positions=None):
    """Forward pass of ResidualAttentionBlock (default config).

    x_positions is accepted for interface parity but unused: with rope=False and
    no kv-cache/mask, positions do not affect the output.
    """
    del x_positions
    B, T, D = x.shape
    assert D % n_head == 0
    hd = D // n_head
    tq = _pick_tq(T)
    nq = T // tq
    scale = 1.0 / math.sqrt(hd)
    Dm = params["w1"].shape[1]

    # Host-side head split of the attention projection weights (pure layout work,
    # done once in XLA; avoids any in-kernel reshape/transpose/lane slicing).
    def heads_out(w):                       # (D, D) -> (H, D, hd): split out-features
        return jnp.transpose(w.reshape(D, n_head, hd), (1, 0, 2))

    def heads_bias(b):                      # (1, D) -> (H, 1, hd)
        return jnp.transpose(b.reshape(1, n_head, hd), (1, 0, 2))

    wq_h = heads_out(params["wq"]); bq_h = heads_bias(params["bq"])
    wk_h = heads_out(params["wk"])
    wv_h = heads_out(params["wv"]); bv_h = heads_bias(params["bv"])
    wo_h = params["wo"].reshape(n_head, hd, D)      # split in-features per head

    args = (x, x,
            params["ln1_g"], params["ln1_b"],
            wq_h, bq_h, wk_h, wv_h, bv_h, wo_h, params["bo"],
            params["ln2_g"], params["ln2_b"],
            params["w1"], params["b1"], params["w2"], params["b2"])

    def full2d(p):      # small 2-D param, full array every step (never re-fetched)
        return pl.BlockSpec(p.shape, lambda b, qi, h: (0, 0))

    def head_spec(p):   # (H, ...) param, select the current head's slice
        return pl.BlockSpec((1,) + p.shape[1:], lambda b, qi, h: (h, 0, 0))

    in_specs = [
        pl.BlockSpec((1, tq, D), lambda b, qi, h: (b, qi, 0)),   # x  (query tile)
        pl.BlockSpec((1, T, D), lambda b, qi, h: (b, 0, 0)),     # x  (full kv seq)
        full2d(params["ln1_g"]), full2d(params["ln1_b"]),
        head_spec(wq_h), head_spec(bq_h), head_spec(wk_h),
        head_spec(wv_h), head_spec(bv_h), head_spec(wo_h),
        full2d(params["bo"]),
        full2d(params["ln2_g"]), full2d(params["ln2_b"]),
        full2d(params["w1"]), full2d(params["b1"]),
        full2d(params["w2"]), full2d(params["b2"]),
    ]

    # advisory cost estimate for the XLA scheduler
    flops = int(B * (24 * T * D * D + 4 * T * T * D))
    transcendentals = int(B * (n_head * T * T + T * Dm))
    bytes_accessed = int(3 * B * T * D * 4 + (4 * D * D + 2 * D * Dm) * 2)
    cost = pl.CostEstimate(flops=flops, transcendentals=transcendentals,
                           bytes_accessed=bytes_accessed)

    # Raise the scoped-VMEM limit only when the working set actually needs it
    # (defaults: 16 MiB v5e / 32 MiB v6e,v7x), so small configs keep the default.
    hd_pad = ((hd + 127) // 128) * 128
    est = (2 * 2 * (2 * D * Dm) * 2            # w1,w2 bf16, double-buffered
           + 2 * 2 * 4 * D * hd_pad * 2        # per-head attn weight slices
           + 4 * (2 * T * D + 4 * tq * D)      # x blocks + output (f32)
           + 2 * (T * D + tq * D)              # LN caches (bf16)
           + 2 * 2 * n_head * T * hd_pad       # K/V caches (bf16, lane-padded)
           + 4 * tq * D                        # accumulator (f32)
           + 4 * (3 * tq * T + 2 * tq * Dm))   # live f32 temporaries
    comp_kwargs = dict(dimension_semantics=("parallel", "arbitrary", "arbitrary"))
    if est > 30 * 1024 * 1024:
        comp_kwargs["vmem_limit_bytes"] = min(int(est * 1.25), 120 * 1024 * 1024)

    return pl.pallas_call(
        functools.partial(residual_block_kernel, scale=scale),
        out_shape=jax.ShapeDtypeStruct((B, T, D), x.dtype),
        grid_spec=pltpu.PrefetchScalarGridSpec(
            num_scalar_prefetch=0,
            grid=(B, nq, n_head),
            in_specs=in_specs,
            out_specs=pl.BlockSpec((1, tq, D), lambda b, qi, h: (b, qi, 0)),
            scratch_shapes=[
                pltpu.VMEM((tq, D), jnp.bfloat16),           # LN(x) of the q tile
                pltpu.VMEM((T, D), jnp.bfloat16),            # LN(x) of the kv seq
                pltpu.VMEM((n_head, T, hd), jnp.bfloat16),   # cached K heads
                pltpu.VMEM((n_head, T, hd), jnp.bfloat16),   # cached V heads
                pltpu.VMEM((tq, D), jnp.float32),            # attn-output accumulator
            ]),
        compiler_params=pltpu.CompilerParams(**comp_kwargs),
        cost_estimate=cost,
    )(*args)


# ---------------------------------------------------------------------------
# deterministic parameter init (synthetic; shapes from the module __init__).
# matmul weights are stored bf16 (MXU-native); biases / LN params stay f32.
# ---------------------------------------------------------------------------
def init_params(key, n_state, ffn_mult=4):
    n_mlp = n_state * ffn_mult
    ks = jax.random.split(key, 16)

    def lin_w(k, din, dout):   # torch Linear init range, stored as (in, out) bf16
        bound = 1.0 / math.sqrt(din)
        w = jax.random.uniform(k, (din, dout), jnp.float32, -bound, bound)
        return w.astype(jnp.bfloat16)

    def lin_b(k, din, dout):
        bound = 1.0 / math.sqrt(din)
        return jax.random.uniform(k, (1, dout), jnp.float32, -bound, bound)

    return {
        "ln1_g": 1.0 + 0.1 * jax.random.normal(ks[0], (1, n_state), jnp.float32),
        "ln1_b": 0.1 * jax.random.normal(ks[1], (1, n_state), jnp.float32),
        "wq": lin_w(ks[2], n_state, n_state), "bq": lin_b(ks[3], n_state, n_state),
        "wk": lin_w(ks[4], n_state, n_state),                     # key: bias=False
        "wv": lin_w(ks[5], n_state, n_state), "bv": lin_b(ks[6], n_state, n_state),
        "wo": lin_w(ks[7], n_state, n_state), "bo": lin_b(ks[8], n_state, n_state),
        "ln2_g": 1.0 + 0.1 * jax.random.normal(ks[9], (1, n_state), jnp.float32),
        "ln2_b": 0.1 * jax.random.normal(ks[10], (1, n_state), jnp.float32),
        "w1": lin_w(ks[11], n_state, n_mlp), "b1": lin_b(ks[12], n_state, n_mlp),
        "w2": lin_w(ks[13], n_mlp, n_state), "b2": lin_b(ks[14], n_mlp, n_state),
    }


# ---------------------------------------------------------------------------
# pure-JAX f32 reference (same bf16-valued weights, exact f32 math)
# ---------------------------------------------------------------------------
def reference(x, params, n_head):
    p32 = {k: v.astype(jnp.float32) for k, v in params.items()}

    def ln(t, g, b):
        mu = t.mean(-1, keepdims=True)
        var = ((t - mu) ** 2).mean(-1, keepdims=True)
        return (t - mu) / jnp.sqrt(var + 1e-5) * g + b

    B, T, D = x.shape
    hd = D // n_head
    lnx = ln(x, p32["ln1_g"], p32["ln1_b"])
    q = lnx @ p32["wq"] + p32["bq"]
    k = lnx @ p32["wk"]
    v = lnx @ p32["wv"] + p32["bv"]
    split = lambda t: t.reshape(B, T, n_head, hd).transpose(0, 2, 1, 3)
    qh, kh, vh = split(q), split(k), split(v)
    s = jnp.einsum("bhqd,bhkd->bhqk", qh, kh) / math.sqrt(hd)
    patt = jax.nn.softmax(s, axis=-1)
    ctx = jnp.einsum("bhqk,bhkd->bhqd", patt, vh).transpose(0, 2, 1, 3).reshape(B, T, D)
    x1 = x + ctx @ p32["wo"] + p32["bo"]
    ln2 = ln(x1, p32["ln2_g"], p32["ln2_b"])
    h1 = ln2 @ p32["w1"] + p32["b1"]
    g = 0.5 * h1 * (1.0 + jax.scipy.special.erf(h1 / math.sqrt(2.0)))
    return x1 + g @ p32["w2"] + p32["b2"]


if __name__ == "__main__":
    B, T, n_state, n_head = 2, 8, 32, 4

    key = jax.random.PRNGKey(0)
    kx, kp = jax.random.split(key)
    x = jax.random.normal(kx, (B, T, n_state), jnp.float32)
    x_positions = jnp.arange(T, dtype=jnp.int32)   # unused (rope=False, no cache)
    params = init_params(kp, n_state)

    out = residual_attention_block(x, params, n_head, x_positions)
    out = jax.block_until_ready(out)

    ref = jax.block_until_ready(reference(x, params, n_head))
    err = float(jnp.max(jnp.abs(out - ref)))
    assert out.shape == (B, T, n_state) and bool(jnp.all(jnp.isfinite(out))), "bad output"
    # kernel uses bf16 MXU operands with f32 accumulation; reference is pure f32
    assert err < 1e-1, f"mismatch vs reference: max abs err {err}"

    print("KERNEL_OK")
</pallas_src>

<mosaic_0001>
module attributes {stable_mosaic.version = 11 : i64} {
  func.func @residual_block_kernel(%arg0: i32, %arg1: i32, %arg2: i32, %arg3: memref<1x8x32xf32, #tpu.memory_space<vmem>>, %arg4: memref<1x8x32xf32, #tpu.memory_space<vmem>>, %arg5: memref<1x32xf32, #tpu.memory_space<vmem>>, %arg6: memref<1x32xf32, #tpu.memory_space<vmem>>, %arg7: memref<1x32x8xbf16, #tpu.memory_space<vmem>>, %arg8: memref<1x1x8xf32, #tpu.memory_space<vmem>>, %arg9: memref<1x32x8xbf16, #tpu.memory_space<vmem>>, %arg10: memref<1x32x8xbf16, #tpu.memory_space<vmem>>, %arg11: memref<1x1x8xf32, #tpu.memory_space<vmem>>, %arg12: memref<1x8x32xbf16, #tpu.memory_space<vmem>>, %arg13: memref<1x32xf32, #tpu.memory_space<vmem>>, %arg14: memref<1x32xf32, #tpu.memory_space<vmem>>, %arg15: memref<1x32xf32, #tpu.memory_space<vmem>>, %arg16: memref<32x128xbf16, #tpu.memory_space<vmem>>, %arg17: memref<1x128xf32, #tpu.memory_space<vmem>>, %arg18: memref<128x32xbf16, #tpu.memory_space<vmem>>, %arg19: memref<1x32xf32, #tpu.memory_space<vmem>>, %arg20: memref<1x8x32xf32, #tpu.memory_space<vmem>>, %arg21: memref<8x32xbf16, #tpu.memory_space<vmem>>, %arg22: memref<8x32xbf16, #tpu.memory_space<vmem>>, %arg23: memref<4x8x8xbf16, #tpu.memory_space<vmem>>, %arg24: memref<4x8x8xbf16, #tpu.memory_space<vmem>>, %arg25: memref<8x32xf32, #tpu.memory_space<vmem>>) attributes {dimension_semantics = [#tpu.dimension_semantics<parallel>, #tpu.dimension_semantics<arbitrary>, #tpu.dimension_semantics<arbitrary>], iteration_bounds = array<i64: 2, 1, 4>, scalar_prefetch = 0 : i64, scratch_operands = 5 : i64, tpu.core_type = #tpu.core_type<tc>, window_params = [{transform_indices = @transform_0, window_bounds = array<i64: 1, 8, 32>}, {transform_indices = @transform_1, window_bounds = array<i64: 1, 8, 32>}, {pipeline_mode = #tpu.pipeline_mode<synchronous>, transform_indices = @transform_2, window_bounds = array<i64: 1, 32>}, {pipeline_mode = #tpu.pipeline_mode<synchronous>, transform_indices = @transform_3, window_bounds = array<i64: 1, 32>}, {transform_indices = @transform_4, window_bounds = array<i64: 1, 32, 8>}, {transform_indices = @transform_5, window_bounds = array<i64: 1, 1, 8>}, {transform_indices = @transform_6, window_bounds = array<i64: 1, 32, 8>}, {transform_indices = @transform_7, window_bounds = array<i64: 1, 32, 8>}, {transform_indices = @transform_8, window_bounds = array<i64: 1, 1, 8>}, {transform_indices = @transform_9, window_bounds = array<i64: 1, 8, 32>}, {pipeline_mode = #tpu.pipeline_mode<synchronous>, transform_indices = @transform_10, window_bounds = array<i64: 1, 32>}, {pipeline_mode = #tpu.pipeline_mode<synchronous>, transform_indices = @transform_11, window_bounds = array<i64: 1, 32>}, {pipeline_mode = #tpu.pipeline_mode<synchronous>, transform_indices = @transform_12, window_bounds = array<i64: 1, 32>}, {pipeline_mode = #tpu.pipeline_mode<synchronous>, transform_indices = @transform_13, window_bounds = array<i64: 32, 128>}, {pipeline_mode = #tpu.pipeline_mode<synchronous>, transform_indices = @transform_14, window_bounds = array<i64: 1, 128>}, {pipeline_mode = #tpu.pipeline_mode<synchronous>, transform_indices = @transform_15, window_bounds = array<i64: 128, 32>}, {pipeline_mode = #tpu.pipeline_mode<synchronous>, transform_indices = @transform_16, window_bounds = array<i64: 1, 32>}, {transform_indices = @transform_17, window_bounds = array<i64: 1, 8, 32>}]} {
    %c0_i32 = arith.constant 0 : i32
    %0 = arith.cmpi eq, %arg2, %c0_i32 : i32
    %1 = arith.extui %0 : i1 to i32
    %c0_i32_0 = arith.constant 0 : i32
    %2 = arith.cmpi ne, %1, %c0_i32_0 : i32
    scf.if %2 {
      %c0_31 = arith.constant 0 : index
      %c0_32 = arith.constant 0 : index
      %c0_33 = arith.constant 0 : index
      %51 = vector.load %arg3[%c0_31, %c0_32, %c0_33] : memref<1x8x32xf32, #tpu.memory_space<vmem>>, vector<1x8x32xf32>
      %52 = vector.shape_cast %51 : vector<1x8x32xf32> to vector<8x32xf32>
      %c0_34 = arith.constant 0 : index
      %c0_35 = arith.constant 0 : index
      %53 = vector.load %arg5[%c0_34, %c0_35] : memref<1x32xf32, #tpu.memory_space<vmem>>, vector<1x32xf32>
      %c0_36 = arith.constant 0 : index
      %c0_37 = arith.constant 0 : index
      %54 = vector.load %arg6[%c0_36, %c0_37] : memref<1x32xf32, #tpu.memory_space<vmem>>, vector<1x32xf32>
      %cst_38 = arith.constant dense<0.000000e+00> : vector<8xf32>
      %55 = vector.multi_reduction <add>, %52, %cst_38 [1] : vector<8x32xf32> to vector<8xf32>
      %56 = vector.shape_cast %55 : vector<8xf32> to vector<8x1xf32>
      %cst_39 = arith.constant 3.200000e+01 : f32
      %57 = vector.broadcast %cst_39 : f32 to vector<8x1xf32>
      %58 = arith.divf %56, %57 : vector<8x1xf32>
      %59 = vector.broadcast %58 : vector<8x1xf32> to vector<8x32xf32>
      %60 = arith.subf %52, %59 : vector<8x32xf32>
      %61 = arith.mulf %60, %60 : vector<8x32xf32>
      %cst_40 = arith.constant dense<0.000000e+00> : vector<8xf32>
      %62 = vector.multi_reduction <add>, %61, %cst_40 [1] : vector<8x32xf32> to vector<8xf32>
      %63 = vector.shape_cast %62 : vector<8xf32> to vector<8x1xf32>
      %cst_41 = arith.constant 3.200000e+01 : f32
      %64 = vector.broadcast %cst_41 : f32 to vector<8x1xf32>
      %65 = arith.divf %63, %64 : vector<8x1xf32>
      %cst_42 = arith.constant 9.99999974E-6 : f32
      %66 = vector.broadcast %cst_42 : f32 to vector<8x1xf32>
      %67 = arith.addf %65, %66 : vector<8x1xf32>
      %68 = math.rsqrt %67 : vector<8x1xf32>
      %69 = vector.broadcast %68 : vector<8x1xf32> to vector<8x32xf32>
      %70 = arith.mulf %60, %69 : vector<8x32xf32>
      %71 = vector.broadcast %53 : vector<1x32xf32> to vector<8x32xf32>
      %72 = arith.mulf %70, %71 : vector<8x32xf32>
      %73 = vector.broadcast %54 : vector<1x32xf32> to vector<8x32xf32>
      %74 = arith.addf %72, %73 : vector<8x32xf32>
      %75 = arith.truncf %74 : vector<8x32xf32> to vector<8x32xbf16>
      %c0_43 = arith.constant 0 : index
      %c0_44 = arith.constant 0 : index
      %76 = vector.load %arg21[%c0_43, %c0_44] : memref<8x32xbf16, #tpu.memory_space<vmem>>, vector<8x32xbf16>
      tpu.vector_store %arg21[%c0_43, %c0_44], %75 {strides = array<i32>} : memref<8x32xbf16, #tpu.memory_space<vmem>>, vector<8x32xbf16>,
      %cst_45 = arith.constant 0.000000e+00 : f32
      %77 = vector.broadcast %cst_45 : f32 to vector<8x32xf32>
      %c0_46 = arith.constant 0 : index
      %c0_47 = arith.constant 0 : index
      %78 = vector.load %arg25[%c0_46, %c0_47] : memref<8x32xf32, #tpu.memory_space<vmem>>, vector<8x32xf32>
      tpu.vector_store %arg25[%c0_46, %c0_47], %77 {strides = array<i32>} : memref<8x32xf32, #tpu.memory_space<vmem>>, vector<8x32xf32>,
    } else {
    }
    %c0_i32_1 = arith.constant 0 : i32
    %3 = arith.cmpi eq, %arg1, %c0_i32_1 : i32
    %c0_i32_2 = arith.constant 0 : i32
    %4 = arith.cmpi eq, %arg2, %c0_i32_2 : i32
    %5 = arith.andi %3, %4 : i1
    %6 = arith.extui %5 : i1 to i32
    %c0_i32_3 = arith.constant 0 : i32
    %7 = arith.cmpi ne, %6, %c0_i32_3 : i32
    scf.if %7 {
      %c0_31 = arith.constant 0 : index
      %c0_32 = arith.constant 0 : index
      %c0_33 = arith.constant 0 : index
      %51 = vector.load %arg4[%c0_31, %c0_32, %c0_33] : memref<1x8x32xf32, #tpu.memory_space<vmem>>, vector<1x8x32xf32>
      %52 = vector.shape_cast %51 : vector<1x8x32xf32> to vector<8x32xf32>
      %c0_34 = arith.constant 0 : index
      %c0_35 = arith.constant 0 : index
      %53 = vector.load %arg5[%c0_34, %c0_35] : memref<1x32xf32, #tpu.memory_space<vmem>>, vector<1x32xf32>
      %c0_36 = arith.constant 0 : index
      %c0_37 = arith.constant 0 : index
      %54 = vector.load %arg6[%c0_36, %c0_37] : memref<1x32xf32, #tpu.memory_space<vmem>>, vector<1x32xf32>
      %cst_38 = arith.constant dense<0.000000e+00> : vector<8xf32>
      %55 = vector.multi_reduction <add>, %52, %cst_38 [1] : vector<8x32xf32> to vector<8xf32>
      %56 = vector.shape_cast %55 : vector<8xf32> to vector<8x1xf32>
      %cst_39 = arith.constant 3.200000e+01 : f32
      %57 = vector.broadcast %cst_39 : f32 to vector<8x1xf32>
      %58 = arith.divf %56, %57 : vector<8x1xf32>
      %59 = vector.broadcast %58 : vector<8x1xf32> to vector<8x32xf32>
      %60 = arith.subf %52, %59 : vector<8x32xf32>
      %61 = arith.mulf %60, %60 : vector<8x32xf32>
      %cst_40 = arith.constant dense<0.000000e+00> : vector<8xf32>
      %62 = vector.multi_reduction <add>, %61, %cst_40 [1] : vector<8x32xf32> to vector<8xf32>
      %63 = vector.shape_cast %62 : vector<8xf32> to vector<8x1xf32>
      %cst_41 = arith.constant 3.200000e+01 : f32
      %64 = vector.broadcast %cst_41 : f32 to vector<8x1xf32>
      %65 = arith.divf %63, %64 : vector<8x1xf32>
      %cst_42 = arith.constant 9.99999974E-6 : f32
      %66 = vector.broadcast %cst_42 : f32 to vector<8x1xf32>
      %67 = arith.addf %65, %66 : vector<8x1xf32>
      %68 = math.rsqrt %67 : vector<8x1xf32>
      %69 = vector.broadcast %68 : vector<8x1xf32> to vector<8x32xf32>
      %70 = arith.mulf %60, %69 : vector<8x32xf32>
      %71 = vector.broadcast %53 : vector<1x32xf32> to vector<8x32xf32>
      %72 = arith.mulf %70, %71 : vector<8x32xf32>
      %73 = vector.broadcast %54 : vector<1x32xf32> to vector<8x32xf32>
      %74 = arith.addf %72, %73 : vector<8x32xf32>
      %75 = arith.truncf %74 : vector<8x32xf32> to vector<8x32xbf16>
      %c0_43 = arith.constant 0 : index
      %c0_44 = arith.constant 0 : index
      %76 = vector.load %arg22[%c0_43, %c0_44] : memref<8x32xbf16, #tpu.memory_space<vmem>>, vector<8x32xbf16>
      tpu.vector_store %arg22[%c0_43, %c0_44], %75 {strides = array<i32>} : memref<8x32xbf16, #tpu.memory_space<vmem>>, vector<8x32xbf16>,
    } else {
    }
    %c0_i32_4 = arith.constant 0 : i32
    %8 = arith.cmpi eq, %arg1, %c0_i32_4 : i32
    %9 = arith.extui %8 : i1 to i32
    %c0_i32_5 = arith.constant 0 : i32
    %10 = arith.cmpi ne, %9, %c0_i32_5 : i32
    scf.if %10 {
      %c0_31 = arith.constant 0 : index
      %c0_32 = arith.constant 0 : index
      %51 = vector.load %arg22[%c0_31, %c0_32] : memref<8x32xbf16, #tpu.memory_space<vmem>>, vector<8x32xbf16>
      %c0_33 = arith.constant 0 : index
      %c0_34 = arith.constant 0 : index
      %c0_35 = arith.constant 0 : index
      %52 = vector.load %arg9[%c0_33, %c0_34, %c0_35] : memref<1x32x8xbf16, #tpu.memory_space<vmem>>, vector<1x32x8xbf16>
      %53 = vector.shape_cast %52 : vector<1x32x8xbf16> to vector<32x8xbf16>
      %cst_36 = arith.constant dense<0.000000e+00> : vector<8x8xf32>
      %54 = tpu.matmul %51, %53, %cst_36 {dimension_numbers = #tpu.dot_dimension_numbers<[1], [0], [0], [1], [0, 0, 1, 1], [], []>} : vector<8x32xbf16>, vector<32x8xbf16>, vector<8x8xf32> -> vector<8x8xf32>
      %55 = arith.truncf %54 : vector<8x8xf32> to vector<8x8xbf16>
      %56 = arith.index_cast %arg2 : i32 to index
      %c0_37 = arith.constant 0 : index
      %c0_38 = arith.constant 0 : index
      %57 = vector.load %arg23[%56, %c0_37, %c0_38] : memref<4x8x8xbf16, #tpu.memory_space<vmem>>, vector<1x8x8xbf16>
      %58 = vector.shape_cast %57 : vector<1x8x8xbf16> to vector<8x8xbf16>
      %59 = vector.shape_cast %55 : vector<8x8xbf16> to vector<1x8x8xbf16>
      tpu.vector_store %arg23[%56, %c0_37, %c0_38], %59 {strides = array<i32>} : memref<4x8x8xbf16, #tpu.memory_space<vmem>>, vector<1x8x8xbf16>,
      %c0_39 = arith.constant 0 : index
      %c0_40 = arith.constant 0 : index
      %c0_41 = arith.constant 0 : index
      %60 = vector.load %arg10[%c0_39, %c0_40, %c0_41] : memref<1x32x8xbf16, #tpu.memory_space<vmem>>, vector<1x32x8xbf16>
      %61 = vector.shape_cast %60 : vector<1x32x8xbf16> to vector<32x8xbf16>
      %cst_42 = arith.constant dense<0.000000e+00> : vector<8x8xf32>
      %62 = tpu.matmul %51, %61, %cst_42 {dimension_numbers = #tpu.dot_dimension_numbers<[1], [0], [0], [1], [0, 0, 1, 1], [], []>} : vector<8x32xbf16>, vector<32x8xbf16>, vector<8x8xf32> -> vector<8x8xf32>
      %c0_43 = arith.constant 0 : index
      %c0_44 = arith.constant 0 : index
      %c0_45 = arith.constant 0 : index
      %63 = vector.load %arg11[%c0_43, %c0_44, %c0_45] : memref<1x1x8xf32, #tpu.memory_space<vmem>>, vector<1x1x8xf32>
      %64 = vector.shape_cast %63 : vector<1x1x8xf32> to vector<1x8xf32>
      %65 = vector.broadcast %64 : vector<1x8xf32> to vector<8x8xf32>
      %66 = arith.addf %62, %65 : vector<8x8xf32>
      %67 = arith.truncf %66 : vector<8x8xf32> to vector<8x8xbf16>
      %68 = arith.index_cast %arg2 : i32 to index
      %c0_46 = arith.constant 0 : index
      %c0_47 = arith.constant 0 : index
      %69 = vector.load %arg24[%68, %c0_46, %c0_47] : memref<4x8x8xbf16, #tpu.memory_space<vmem>>, vector<1x8x8xbf16>
      %70 = vector.shape_cast %69 : vector<1x8x8xbf16> to vector<8x8xbf16>
      %71 = vector.shape_cast %67 : vector<8x8xbf16> to vector<1x8x8xbf16>
      tpu.vector_store %arg24[%68, %c0_46, %c0_47], %71 {strides = array<i32>} : memref<4x8x8xbf16, #tpu.memory_space<vmem>>, vector<1x8x8xbf16>,
    } else {
    }
    %c0 = arith.constant 0 : index
    %c0_6 = arith.constant 0 : index
    %11 = vector.load %arg21[%c0, %c0_6] : memref<8x32xbf16, #tpu.memory_space<vmem>>, vector<8x32xbf16>
    %c0_7 = arith.constant 0 : index
    %c0_8 = arith.constant 0 : index
    %c0_9 = arith.constant 0 : index
    %12 = vector.load %arg7[%c0_7, %c0_8, %c0_9] : memref<1x32x8xbf16, #tpu.memory_space<vmem>>, vector<1x32x8xbf16>
    %13 = vector.shape_cast %12 : vector<1x32x8xbf16> to vector<32x8xbf16>
    %cst = arith.constant dense<0.000000e+00> : vector<8x8xf32>
    %14 = tpu.matmul %11, %13, %cst {dimension_numbers = #tpu.dot_dimension_numbers<[1], [0], [0], [1], [0, 0, 1, 1], [], []>} : vector<8x32xbf16>, vector<32x8xbf16>, vector<8x8xf32> -> vector<8x8xf32>
    %c0_10 = arith.constant 0 : index
    %c0_11 = arith.constant 0 : index
    %c0_12 = arith.constant 0 : index
    %15 = vector.load %arg8[%c0_10, %c0_11, %c0_12] : memref<1x1x8xf32, #tpu.memory_space<vmem>>, vector<1x1x8xf32>
    %16 = vector.shape_cast %15 : vector<1x1x8xf32> to vector<1x8xf32>
    %17 = vector.broadcast %16 : vector<1x8xf32> to vector<8x8xf32>
    %18 = arith.addf %14, %17 : vector<8x8xf32>
    %cst_13 = arith.constant 0.353553385 : f32
    %19 = vector.broadcast %cst_13 : f32 to vector<8x8xf32>
    %20 = arith.mulf %18, %19 : vector<8x8xf32>
    %21 = arith.truncf %20 : vector<8x8xf32> to vector<8x8xbf16>
    %22 = arith.index_cast %arg2 : i32 to index
    %c0_14 = arith.constant 0 : index
    %c0_15 = arith.constant 0 : index
    %23 = vector.load %arg23[%22, %c0_14, %c0_15] : memref<4x8x8xbf16, #tpu.memory_space<vmem>>, vector<1x8x8xbf16>
    %24 = vector.shape_cast %23 : vector<1x8x8xbf16> to vector<8x8xbf16>
    %cst_16 = arith.constant dense<0.000000e+00> : vector<8x8xf32>
    %25 = tpu.matmul %21, %24, %cst_16 {dimension_numbers = #tpu.dot_dimension_numbers<[1], [1], [0], [0], [0, 0, 1, 0], [], []>} : vector<8x8xbf16>, vector<8x8xbf16>, vector<8x8xf32> -> vector<8x8xf32>
    %cst_17 = arith.constant dense<0xFF800000> : vector<8xf32>
    %26 = vector.multi_reduction <maximumf>, %25, %cst_17 [1] : vector<8x8xf32> to vector<8xf32>
    %27 = vector.shape_cast %26 : vector<8xf32> to vector<8x1xf32>
    %28 = vector.broadcast %27 : vector<8x1xf32> to vector<8x8xf32>
    %29 = arith.subf %25, %28 : vector<8x8xf32>
    %30 = math.exp %29 : vector<8x8xf32>
    %cst_18 = arith.constant dense<0.000000e+00> : vector<8xf32>
    %31 = vector.multi_reduction <add>, %30, %cst_18 [1] : vector<8x8xf32> to vector<8xf32>
    %32 = vector.shape_cast %31 : vector<8xf32> to vector<8x1xf32>
    %33 = tpu.reciprocal %32 {approx = true} : vector<8x1xf32> -> vector<8x1xf32>
    %34 = vector.broadcast %33 : vector<8x1xf32> to vector<8x8xf32>
    %35 = arith.mulf %30, %34 : vector<8x8xf32>
    %36 = arith.truncf %35 : vector<8x8xf32> to vector<8x8xbf16>
    %37 = arith.index_cast %arg2 : i32 to index
    %c0_19 = arith.constant 0 : index
    %c0_20 = arith.constant 0 : index
    %38 = vector.load %arg24[%37, %c0_19, %c0_20] : memref<4x8x8xbf16, #tpu.memory_space<vmem>>, vector<1x8x8xbf16>
    %39 = vector.shape_cast %38 : vector<1x8x8xbf16> to vector<8x8xbf16>
    %cst_21 = arith.constant dense<0.000000e+00> : vector<8x8xf32>
    %40 = tpu.matmul %36, %39, %cst_21 {dimension_numbers = #tpu.dot_dimension_numbers<[1], [0], [0], [1], [0, 0, 1, 1], [], []>} : vector<8x8xbf16>, vector<8x8xbf16>, vector<8x8xf32> -> vector<8x8xf32>
    %c0_22 = arith.constant 0 : index
    %c0_23 = arith.constant 0 : index
    %41 = vector.load %arg25[%c0_22, %c0_23] : memref<8x32xf32, #tpu.memory_space<vmem>>, vector<8x32xf32>
    %42 = arith.truncf %40 : vector<8x8xf32> to vector<8x8xbf16>
    %c0_24 = arith.constant 0 : index
    %c0_25 = arith.constant 0 : index
    %c0_26 = arith.constant 0 : index
    %43 = vector.load %arg12[%c0_24, %c0_25, %c0_26] : memref<1x8x32xbf16, #tpu.memory_space<vmem>>, vector<1x8x32xbf16>
    %44 = vector.shape_cast %43 : vector<1x8x32xbf16> to vector<8x32xbf16>
    %cst_27 = arith.constant dense<0.000000e+00> : vector<8x32xf32>
    %45 = tpu.matmul %42, %44, %cst_27 {dimension_numbers = #tpu.dot_dimension_numbers<[1], [0], [0], [1], [0, 0, 1, 1], [], []>} : vector<8x8xbf16>, vector<8x32xbf16>, vector<8x32xf32> -> vector<8x32xf32>
    %46 = arith.addf %41, %45 : vector<8x32xf32>
    %c0_28 = arith.constant 0 : index
    %c0_29 = arith.constant 0 : index
    %47 = vector.load %arg25[%c0_28, %c0_29] : memref<8x32xf32, #tpu.memory_space<vmem>>, vector<8x32xf32>
    tpu.vector_store %arg25[%c0_28, %c0_29], %46 {strides = array<i32>} : memref<8x32xf32, #tpu.memory_space<vmem>>, vector<8x32xf32>,
    %c3_i32 = arith.constant 3 : i32
    %48 = arith.cmpi eq, %arg2, %c3_i32 : i32
    %49 = arith.extui %48 : i1 to i32
    %c0_i32_30 = arith.constant 0 : i32
    %50 = arith.cmpi ne, %49, %c0_i32_30 : i32
    scf.if %50 {
      %c0_31 = arith.constant 0 : index
      %c0_32 = arith.constant 0 : index
      %c0_33 = arith.constant 0 : index
      %51 = vector.load %arg3[%c0_31, %c0_32, %c0_33] : memref<1x8x32xf32, #tpu.memory_space<vmem>>, vector<1x8x32xf32>
      %52 = vector.shape_cast %51 : vector<1x8x32xf32> to vector<8x32xf32>
      %c0_34 = arith.constant 0 : index
      %c0_35 = arith.constant 0 : index
      %53 = vector.load %arg25[%c0_34, %c0_35] : memref<8x32xf32, #tpu.memory_space<vmem>>, vector<8x32xf32>
      %54 = arith.addf %52, %53 : vector<8x32xf32>
      %c0_36 = arith.constant 0 : index
      %c0_37 = arith.constant 0 : index
      %55 = vector.load %arg13[%c0_36, %c0_37] : memref<1x32xf32, #tpu.memory_space<vmem>>, vector<1x32xf32>
      %56 = vector.broadcast %55 : vector<1x32xf32> to vector<8x32xf32>
      %57 = arith.addf %54, %56 : vector<8x32xf32>
      %c0_38 = arith.constant 0 : index
      %c0_39 = arith.constant 0 : index
      %58 = vector.load %arg14[%c0_38, %c0_39] : memref<1x32xf32, #tpu.memory_space<vmem>>, vector<1x32xf32>
      %c0_40 = arith.constant 0 : index
      %c0_41 = arith.constant 0 : index
      %59 = vector.load %arg15[%c0_40, %c0_41] : memref<1x32xf32, #tpu.memory_space<vmem>>, vector<1x32xf32>
      %cst_42 = arith.constant dense<0.000000e+00> : vector<8xf32>
      %60 = vector.multi_reduction <add>, %57, %cst_42 [1] : vector<8x32xf32> to vector<8xf32>
      %61 = vector.shape_cast %60 : vector<8xf32> to vector<8x1xf32>
      %cst_43 = arith.constant 3.200000e+01 : f32
      %62 = vector.broadcast %cst_43 : f32 to vector<8x1xf32>
      %63 = arith.divf %61, %62 : vector<8x1xf32>
      %64 = vector.broadcast %63 : vector<8x1xf32> to vector<8x32xf32>
      %65 = arith.subf %57, %64 : vector<8x32xf32>
      %66 = arith.mulf %65, %65 : vector<8x32xf32>
      %cst_44 = arith.constant dense<0.000000e+00> : vector<8xf32>
      %67 = vector.multi_reduction <add>, %66, %cst_44 [1] : vector<8x32xf32> to vector<8xf32>
      %68 = vector.shape_cast %67 : vector<8xf32> to vector<8x1xf32>
      %cst_45 = arith.constant 3.200000e+01 : f32
      %69 = vector.broadcast %cst_45 : f32 to vector<8x1xf32>
      %70 = arith.divf %68, %69 : vector<8x1xf32>
      %cst_46 = arith.constant 9.99999974E-6 : f32
      %71 = vector.broadcast %cst_46 : f32 to vector<8x1xf32>
      %72 = arith.addf %70, %71 : vector<8x1xf32>
      %73 = math.rsqrt %72 : vector<8x1xf32>
      %74 = vector.broadcast %73 : vector<8x1xf32> to vector<8x32xf32>
      %75 = arith.mulf %65, %74 : vector<8x32xf32>
      %76 = vector.broadcast %58 : vector<1x32xf32> to vector<8x32xf32>
      %77 = arith.mulf %75, %76 : vector<8x32xf32>
      %78 = vector.broadcast %59 : vector<1x32xf32> to vector<8x32xf32>
      %79 = arith.addf %77, %78 : vector<8x32xf32>
      %80 = arith.truncf %79 : vector<8x32xf32> to vector<8x32xbf16>
      %c0_47 = arith.constant 0 : index
      %c0_48 = arith.constant 0 : index
      %81 = vector.load %arg16[%c0_47, %c0_48] : memref<32x128xbf16, #tpu.memory_space<vmem>>, vector<32x128xbf16>
      %cst_49 = arith.constant dense<0.000000e+00> : vector<8x128xf32>
      %82 = tpu.matmul %80, %81, %cst_49 {dimension_numbers = #tpu.dot_dimension_numbers<[1], [0], [0], [1], [0, 0, 1, 1], [], []>} : vector<8x32xbf16>, vector<32x128xbf16>, vector<8x128xf32> -> vector<8x128xf32>
      %c0_50 = arith.constant 0 : index
      %c0_51 = arith.constant 0 : index
      %83 = vector.load %arg17[%c0_50, %c0_51] : memref<1x128xf32, #tpu.memory_space<vmem>>, vector<1x128xf32>
      %84 = vector.broadcast %83 : vector<1x128xf32> to vector<8x128xf32>
      %85 = arith.addf %82, %84 : vector<8x128xf32>
      %cst_52 = arith.constant 5.000000e-01 : f32
      %86 = vector.broadcast %cst_52 : f32 to vector<8x128xf32>
      %87 = arith.mulf %86, %85 : vector<8x128xf32>
      %cst_53 = arith.constant 0.707106769 : f32
      %88 = vector.broadcast %cst_53 : f32 to vector<8x128xf32>
      %89 = arith.mulf %85, %88 : vector<8x128xf32>
      %90 = math.absf %89 : vector<8x128xf32>
      %cst_54 = arith.constant 0.327591091 : f32
      %91 = vector.broadcast %cst_54 : f32 to vector<8x128xf32>
      %92 = arith.mulf %91, %90 : vector<8x128xf32>
      %cst_55 = arith.constant 1.000000e+00 : f32
      %93 = vector.broadcast %cst_55 : f32 to vector<8x128xf32>
      %94 = arith.addf %93, %92 : vector<8x128xf32>
      %cst_56 = arith.constant 1.000000e+00 : f32
      %95 = vector.broadcast %cst_56 : f32 to vector<8x128xf32>
      %96 = arith.divf %95, %94 : vector<8x128xf32>
      %cst_57 = arith.constant 1.06140542 : f32
      %97 = vector.broadcast %cst_57 : f32 to vector<8x128xf32>
      %98 = arith.mulf %97, %96 : vector<8x128xf32>
      %cst_58 = arith.constant -1.45315206 : f32
      %99 = vector.broadcast %cst_58 : f32 to vector<8x128xf32>
      %100 = arith.addf %98, %99 : vector<8x128xf32>
      %101 = arith.mulf %100, %96 : vector<8x128xf32>
      %cst_59 = arith.constant 1.42141378 : f32
      %102 = vector.broadcast %cst_59 : f32 to vector<8x128xf32>
      %103 = arith.addf %101, %102 : vector<8x128xf32>
      %104 = arith.mulf %103, %96 : vector<8x128xf32>
      %cst_60 = arith.constant -0.284496725 : f32
      %105 = vector.broadcast %cst_60 : f32 to vector<8x128xf32>
      %106 = arith.addf %104, %105 : vector<8x128xf32>
      %107 = arith.mulf %106, %96 : vector<8x128xf32>
      %cst_61 = arith.constant 0.254829586 : f32
      %108 = vector.broadcast %cst_61 : f32 to vector<8x128xf32>
      %109 = arith.addf %107, %108 : vector<8x128xf32>
      %110 = arith.mulf %109, %96 : vector<8x128xf32>
      %cst_62 = arith.constant 0.000000e+00 : f32
      %111 = vector.broadcast %cst_62 : f32 to vector<8x128xf32>
      %112 = arith.subf %111, %90 : vector<8x128xf32>
      %113 = arith.mulf %112, %90 : vector<8x128xf32>
      %114 = math.exp %113 : vector<8x128xf32>
      %115 = arith.mulf %110, %114 : vector<8x128xf32>
      %cst_63 = arith.constant 1.000000e+00 : f32
      %116 = vector.broadcast %cst_63 : f32 to vector<8x128xf32>
      %117 = arith.subf %116, %115 : vector<8x128xf32>
      %cst_64 = arith.constant 0.000000e+00 : f32
      %118 = vector.broadcast %cst_64 : f32 to vector<8x128xf32>
      %119 = arith.cmpf oge, %89, %118 : vector<8x128xf32>
      %cst_65 = arith.constant 0.000000e+00 : f32
      %120 = vector.broadcast %cst_65 : f32 to vector<8x128xf32>
      %121 = arith.subf %120, %117 : vector<8x128xf32>
      %122 = arith.select %119, %117, %121 : vector<8x128xi1>, vector<8x128xf32>
      %cst_66 = arith.constant 1.000000e+00 : f32
      %123 = vector.broadcast %cst_66 : f32 to vector<8x128xf32>
      %124 = arith.addf %123, %122 : vector<8x128xf32>
      %125 = arith.mulf %87, %124 : vector<8x128xf32>
      %126 = arith.truncf %125 : vector<8x128xf32> to vector<8x128xbf16>
      %c0_67 = arith.constant 0 : index
      %c0_68 = arith.constant 0 : index
      %127 = vector.load %arg18[%c0_67, %c0_68] : memref<128x32xbf16, #tpu.memory_space<vmem>>, vector<128x32xbf16>
      %cst_69 = arith.constant dense<0.000000e+00> : vector<8x32xf32>
      %128 = tpu.matmul %126, %127, %cst_69 {dimension_numbers = #tpu.dot_dimension_numbers<[1], [0], [0], [1], [0, 0, 1, 1], [], []>} : vector<8x128xbf16>, vector<128x32xbf16>, vector<8x32xf32> -> vector<8x32xf32>
      %c0_70 = arith.constant 0 : index
      %c0_71 = arith.constant 0 : index
      %129 = vector.load %arg19[%c0_70, %c0_71] : memref<1x32xf32, #tpu.memory_space<vmem>>, vector<1x32xf32>
      %130 = vector.broadcast %129 : vector<1x32xf32> to vector<8x32xf32>
      %131 = arith.addf %128, %130 : vector<8x32xf32>
      %132 = arith.addf %57, %131 : vector<8x32xf32>
      %c0_72 = arith.constant 0 : index
      %c0_73 = arith.constant 0 : index
      %c0_74 = arith.constant 0 : index
      %133 = vector.load %arg20[%c0_72, %c0_73, %c0_74] : memref<1x8x32xf32, #tpu.memory_space<vmem>>, vector<1x8x32xf32>
      %134 = vector.shape_cast %133 : vector<1x8x32xf32> to vector<8x32xf32>
      %135 = vector.shape_cast %132 : vector<8x32xf32> to vector<1x8x32xf32>
      tpu.vector_store %arg20[%c0_72, %c0_73, %c0_74], %135 {strides = array<i32>} : memref<1x8x32xf32, #tpu.memory_space<vmem>>, vector<1x8x32xf32>,
    } else {
    }
    return
  }
  func.func @transform_0(%arg0: i32, %arg1: i32, %arg2: i32) -> (i32, i32, i32) {
    %c0_i32 = arith.constant 0 : i32
    %c0_i32_0 = arith.constant 0 : i32
    return %arg0, %arg1, %c0_i32 : i32, i32, i32
  }
  func.func @transform_1(%arg0: i32, %arg1: i32, %arg2: i32) -> (i32, i32, i32) {
    %c0_i32 = arith.constant 0 : i32
    %c0_i32_0 = arith.constant 0 : i32
    %c0_i32_1 = arith.constant 0 : i32
    return %arg0, %c0_i32, %c0_i32_0 : i32, i32, i32
  }
  func.func @transform_2(%arg0: i32, %arg1: i32, %arg2: i32) -> (i32, i32) {
    %c0_i32 = arith.constant 0 : i32
    %c0_i32_0 = arith.constant 0 : i32
    %c0_i32_1 = arith.constant 0 : i32
    return %c0_i32, %c0_i32_0 : i32, i32
  }
  func.func @transform_3(%arg0: i32, %arg1: i32, %arg2: i32) -> (i32, i32) {
    %c0_i32 = arith.constant 0 : i32
    %c0_i32_0 = arith.constant 0 : i32
    %c0_i32_1 = arith.constant 0 : i32
    return %c0_i32, %c0_i32_0 : i32, i32
  }
  func.func @transform_4(%arg0: i32, %arg1: i32, %arg2: i32) -> (i32, i32, i32) {
    %c0_i32 = arith.constant 0 : i32
    %c0_i32_0 = arith.constant 0 : i32
    %c0_i32_1 = arith.constant 0 : i32
    return %arg2, %c0_i32, %c0_i32_0 : i32, i32, i32
  }
  func.func @transform_5(%arg0: i32, %arg1: i32, %arg2: i32) -> (i32, i32, i32) {
    %c0_i32 = arith.constant 0 : i32
    %c0_i32_0 = arith.constant 0 : i32
    %c0_i32_1 = arith.constant 0 : i32
    return %arg2, %c0_i32, %c0_i32_0 : i32, i32, i32
  }
  func.func @transform_6(%arg0: i32, %arg1: i32, %arg2: i32) -> (i32, i32, i32) {
    %c0_i32 = arith.constant 0 : i32
    %c0_i32_0 = arith.constant 0 : i32
    %c0_i32_1 = arith.constant 0 : i32
    return %arg2, %c0_i32, %c0_i32_0 : i32, i32, i32
  }
  func.func @transform_7(%arg0: i32, %arg1: i32, %arg2: i32) -> (i32, i32, i32) {
    %c0_i32 = arith.constant 0 : i32
    %c0_i32_0 = arith.constant 0 : i32
    %c0_i32_1 = arith.constant 0 : i32
    return %arg2, %c0_i32, %c0_i32_0 : i32, i32, i32
  }
  func.func @transform_8(%arg0: i32, %arg1: i32, %arg2: i32) -> (i32, i32, i32) {
    %c0_i32 = arith.constant 0 : i32
    %c0_i32_0 = arith.constant 0 : i32
    %c0_i32_1 = arith.constant 0 : i32
    return %arg2, %c0_i32, %c0_i32_0 : i32, i32, i32
  }
  func.func @transform_9(%arg0: i32, %arg1: i32, %arg2: i32) -> (i32, i32, i32) {
    %c0_i32 = arith.constant 0 : i32
    %c0_i32_0 = arith.constant 0 : i32
    %c0_i32_1 = arith.constant 0 : i32
    return %arg2, %c0_i32, %c0_i32_0 : i32, i32, i32
  }
  func.func @transform_10(%arg0: i32, %arg1: i32, %arg2: i32) -> (i32, i32) {
    %c0_i32 = arith.constant 0 : i32
    %c0_i32_0 = arith.constant 0 : i32
    %c0_i32_1 = arith.constant 0 : i32
    return %c0_i32, %c0_i32_0 : i32, i32
  }
  func.func @transform_11(%arg0: i32, %arg1: i32, %arg2: i32) -> (i32, i32) {
    %c0_i32 = arith.constant 0 : i32
    %c0_i32_0 = arith.constant 0 : i32
    %c0_i32_1 = arith.constant 0 : i32
    return %c0_i32, %c0_i32_0 : i32, i32
  }
  func.func @transform_12(%arg0: i32, %arg1: i32, %arg2: i32) -> (i32, i32) {
    %c0_i32 = arith.constant 0 : i32
    %c0_i32_0 = arith.constant 0 : i32
    %c0_i32_1 = arith.constant 0 : i32
    return %c0_i32, %c0_i32_0 : i32, i32
  }
  func.func @transform_13(%arg0: i32, %arg1: i32, %arg2: i32) -> (i32, i32) {
    %c0_i32 = arith.constant 0 : i32
    %c0_i32_0 = arith.constant 0 : i32
    %c0_i32_1 = arith.constant 0 : i32
    return %c0_i32, %c0_i32_0 : i32, i32
  }
  func.func @transform_14(%arg0: i32, %arg1: i32, %arg2: i32) -> (i32, i32) {
    %c0_i32 = arith.constant 0 : i32
    %c0_i32_0 = arith.constant 0 : i32
    %c0_i32_1 = arith.constant 0 : i32
    return %c0_i32, %c0_i32_0 : i32, i32
  }
  func.func @transform_15(%arg0: i32, %arg1: i32, %arg2: i32) -> (i32, i32) {
    %c0_i32 = arith.constant 0 : i32
    %c0_i32_0 = arith.constant 0 : i32
    %c0_i32_1 = arith.constant 0 : i32
    return %c0_i32, %c0_i32_0 : i32, i32
  }
  func.func @transform_16(%arg0: i32, %arg1: i32, %arg2: i32) -> (i32, i32) {
    %c0_i32 = arith.constant 0 : i32
    %c0_i32_0 = arith.constant 0 : i32
    %c0_i32_1 = arith.constant 0 : i32
    return %c0_i32, %c0_i32_0 : i32, i32
  }
  func.func @transform_17(%arg0: i32, %arg1: i32, %arg2: i32) -> (i32, i32, i32) {
    %c0_i32 = arith.constant 0 : i32
    %c0_i32_0 = arith.constant 0 : i32
    return %arg0, %arg1, %c0_i32 : i32, i32, i32
  }
}

</mosaic_0001>

<bundles_post_ra>
// kernel: tpu_custom_call.1
= control target key start
LH: loop header
LB: loop body
LE: loop exit
PB: predicated region body
PF: predicated region fallthrough
CT: control target
= control target key end

     0   :  { %s2319_s0 = inlined_call_operand.vmem [shape: f32[2,8,32], index: 0, kind: input, shape index: {}]   ;;  %s2320_s1 = inlined_call_operand.vmem [shape: f32[2,8,32], index: 1, kind: input, shape index: {}]   ;;  %s2321_s2 = inlined_call_operand.vmem [shape: f32[1,32], index: 2, kind: input, shape index: {}]   ;;  %s2322_s3 = inlined_call_operand.vmem [shape: f32[1,32], index: 3, kind: input, shape index: {}]   ;;  %s2323_s4 = inlined_call_operand.vmem [shape: bf16[4,32,8], index: 4, kind: input, shape index: {}]   ;;  %s2324_s5 = inlined_call_operand.vmem [shape: f32[4,1,8], index: 5, kind: input, shape index: {}]   ;;  %s2325_s6 = inlined_call_operand.vmem [shape: bf16[4,32,8], index: 6, kind: input, shape index: {}]   ;;  %s2326_s7 = inlined_call_operand.vmem [shape: bf16[4,32,8], index: 7, kind: input, shape index: {}]   ;;  %s2327_s8 = inlined_call_operand.vmem [shape: f32[4,1,8], index: 8, kind: input, shape index: {}]   ;;  %s2328_s9 = inlined_call_operand.vmem [shape: bf16[4,8,32], index: 9, kind: input, shape index: {}]   ;;  %s2329_s10 = inlined_call_operand.vmem [shape: f32[1,32], index: 10, kind: input, shape index: {}]   ;;  %s2330_s11 = inlined_call_operand.vmem [shape: f32[1,32], index: 11, kind: input, shape index: {}]   ;;  %s2331_s12 = inlined_call_operand.vmem [shape: f32[1,32], index: 12, kind: input, shape index: {}]   ;;  %s2332_s13 = inlined_call_operand.vmem [shape: bf16[32,128], index: 13, kind: input, shape index: {}]   ;;  %s2333_s14 = inlined_call_operand.vmem [shape: f32[1,128], index: 14, kind: input, shape index: {}]   ;;  %s2334_s15 = inlined_call_operand.vmem [shape: bf16[128,32], index: 15, kind: input, shape index: {}]   ;;  %s2335_s16 = inlined_call_operand.vmem [shape: f32[1,32], index: 16, kind: input, shape index: {}]   ;;  %s2336_s17 = inlined_call_operand.hbm [shape: f32[2,8,32], index: 17, kind: output, shape index: {}]  }
   0x1   :  { %2352 = sst [smem:[#allocation22_spill]] %s2319_s0 }
   0x2   :  { %2353 = sst [smem:[#allocation23_spill]] %s2320_s1 }
   0x3   :  { %2354 = sst [smem:[#allocation24_spill]] %s2330_s11 }
   0x4   :  { %2355 = sst [smem:[#allocation25_spill]] %s2331_s12 }
   0x5   :  { %2356 = sst [smem:[#allocation26_spill]] %s2333_s14 }
   0x6   :  { %2357 = sst [smem:[#allocation27_spill]] %s2334_s15 }
   0x7   :  { %2358 = sst [smem:[#allocation28_spill]] %s2335_s16 }
   0x8   :  { %2359 = sst [smem:[#allocation29_spill]] %s2336_s17 }
   0x9   :  { %22 = vsyncpa [#allocation8], 0 }
   0xa   :  { %24 = vsyncpa [#allocation8 + $0x1], 0  ;;  %s2036_s24 = smov 0   ;;  %s2038_s25 = smov 0  }
   0xb   :  { %s2040_s26 = smov 0   ;;  %s2042_s27 = smov 0  }
   0xc   :  { %s2044_s28 = smov 0   ;;  %s2046_s29 = smov 0  }
   0xd   :  { %s2048_s0 = smov 0   ;;  %s2050_s30 = smov 0  }
   0xe LB: > { %2360 = sst [smem:[#allocation10_spill]] %s1910_s24  ;;  %s1579_s18 = sadd.s32 4294967295, %s1938_s30   ;;  %s1938_s30 = sphi %s2050_s30, %s30_s30   ;;  %s1934_s0 = sphi %s2048_s0, %s2397_s0   ;;  %s1930_s29 = sphi %s2046_s29, %s2396_s29   ;;  %s1926_s28 = sphi %s2044_s28, %s2395_s28   ;;  %s1922_s27 = sphi %s2042_s27, %s2394_s27   ;;  %s1918_s26 = sphi %s2040_s26, %s2393_s26   ;;  %s1914_s25 = sphi %s2038_s25, %s2392_s25   ;;  %s1910_s24 = sphi %s2036_s24, %s2391_s24  }
   0xf   : > { %2361 = sst [smem:[#allocation11_spill]] %s1914_s25  ;;  %s1580_s19 = sadd.s32 4294967294, %s1938_s30  }
  0x10   : > { %2362 = sst [smem:[#allocation12_spill]] %s1918_s26  ;;  %s42_s1 = sadd.s32 1, %s1930_s29 }
  0x11   : > { %2363 = sst [smem:[#allocation13_spill]] %s1926_s28  ;;  %p43_p0 = scmp.ge.s32.totalorder %s42_s1, 4 }
  0x12   : > { %2364 = sst [smem:[#allocation14_spill]] %s1930_s29  ;;  %s49_s20 = sadd.s32 1, %s1934_s0 }
  0x13   : > { %2365 = sst [smem:[#allocation15_spill]] %s1934_s0  ;;  %p467_p1 = scmp.ne.s32.totalorder %s1918_s26, %s1914_s25 }
  0x14   : > { %2366 = sst [smem:[#allocation16_spill]] %s1938_s30  ;;  %p468_p2 = scmp.eq.s32.totalorder %s1579_s18, 7 }
  0x15   : > { %s2399_s1 = smov (%p43_p0, %s42_s1), 0  ;;  %s2401_s20 = smov (!%p43_p0, %s49_s20), %s1934_s0 }
  0x16   : > { %2367 = sst [smem:[#allocation17_spill]] %s2399_s1  ;;  %p2085_p3 = por %p468_p2, %p467_p1 }
  0x17   : > { %p473_p4 = scmp.ne.s32.totalorder %s1914_s25, %s1910_s24  ;;  %p51_p5 = scmp.ge.s32.totalorder %s2401_s20, 2 }
  0x18   : > { %s2368_s21 = scalar_select %p2085_p3, 1, 0 }
  0x19   : > { %p474_p6 = scmp.eq.s32.totalorder %s1580_s19, 7  ;;  %p1583_p7 = scmp.ge.s32.totalorder %s1938_s30, 1 }
  0x1a   : > { %2369 = sst [smem:[#allocation18_spill]] %s2368_s21  ;;  %p579_p8 = scmp.lt.s32.totalorder %s1938_s30, 9 }
  0x1b   : > { %s2403_s20 = smov (%p51_p5, %s2401_s20), 0  ;;  %p2095_p9 = por %p474_p6, %p473_p4 }
  0x1c   : > { %2370 = sst [smem:[#allocation19_spill]] %s2403_s20  ;;  %p580_p10 = pnand %p1583_p7, %p579_p8 }
  0x1d   : > { %s2371_s22 = scalar_select %p2095_p9, 1, 0 }
  0x1e   : > { %s452_s23 = ssub.s32 %s1934_s0, %s2403_s20  ;;  %s457_s18 = sadd.s32 1, %s1918_s26 }
  0x1f   : > { %2372 = sst [smem:[#allocation20_spill]] %s2371_s22  ;;  %p455_p11 = scmp.eq.s32.totalorder %s452_s23, 0 }
  0x20   : > { %583 = sbr.rel (%p580_p10) target bundleno = 2586 (0xa1a), region = 88  ;;  %s2345_s19 = sand.u32 (!%p580_p10), 1, %s1914_s25  }
  0x21   : > { %s2103_s1 = scalar_select %p455_p11, %s1918_s26, %s457_s18  }
  0x22   : > { %p662_p12 = scmp.lt.s32.totalorder (!%p580_p10), %s1926_s28, 1  ;;  %s2109_s29 = sshll.u32 (!%p580_p10), %s2345_s19, 3 }
  0x23   : > { %2373 = sst [smem:[#allocation21_spill]] %s2103_s1  ;;  %p673_p13 = scmp.lt.s32.totalorder (!%p580_p10), %s1922_s27, 3 }
  0x24   : > { %p699_p0 = scmp.eq.s32.totalorder (!%p580_p10), %s1922_s27, 0  ;;  %s2374_s26 = sld [smem:[#allocation22_spill]] (!%p580_p10) }
  0x25   : > { %s663_s20 = scalar_select %p662_p12, %s1926_s28, 1 }
  0x26   : > { %s2115_s23 = scalar_select %p673_p13, %s1922_s27, 3 }
  0x27   : > { %s1585_s18 = sshll.u32 %s663_s20, 3  ;;  %s2375_s19 = sld [smem:[#allocation23_spill]] }
  0x28   : > { %s1639_s21 = sshll.u32 %s2115_s23, 4  ;;  %s693_s25 = scalar_lea.vmem %s2327_s8, %s2115_s23 }
  0x29   : > { %s2135_s12 = scalar_lea.vmem %s2323_s4, %s1639_s21  ;;  %s2145_s24 = scalar_lea.vmem %s2326_s7, %s1639_s21 }
  0x2a   : > { %s2120_s22 = scalar_lea.vmem %s2374_s26, %s1585_s18  ;;  %s2140_s26 = scalar_lea.vmem %s2325_s6, %s1639_s21 }
  0x2b   : > { %s1593_s28 = sshll.u32 %s2115_s23, 2  ;;  %s661_s15 = scalar_lea.vmem [#allocation7], %s2109_s29 }
  0x2c   : > { %s2155_s14 = scalar_lea.vmem %s2328_s9, %s1593_s28  ;;  %p1594_p1 = scmp.ne.s32.totalorder %s1922_s27, 0 }
  0x2d   : > { %s2125_s17 = scalar_lea.vmem %s2375_s19, %s1585_s18 }
  0x2e   : > { %702 = sbr.rel (%p1594_p1) target bundleno = 363 (0x16b), region = 92 }
  0x33   : > { %v703_v0 = vld [vmem:[%s2120_s22] sm:$0xff]  ;;  %vm706_vm0 = vcmask 261120   ;;  %v1940_v2 = vmov 0.0   ;;  %vm736_vm1 = vcmask 257024  }
  0x34   : > { %v707_v1 = vsel %vm706_vm0, %v703_v0, 0.0  ;;  %738 = vst.msk [vmem:[#allocation6] sm:$0xff] %vm706_vm0, %v1940_v2  ;;  %v1595_v12 = vld [vmem:[%s2321_s2] ss:$0 sm:$0xff] }
  0x35   : > { %708 = vadd.xlane.f32.xlu0 %v707_v1  ;;  %v1596_v14 = vld [vmem:[%s2322_s3] ss:$0 sm:$0xff] }
  0xbe   : > { %v709_v3 = vpop.xlane.xlu0 %708 }
  0xbf   : > { %v711_v4 = vmul.f32 0.03125, %v709_v3 }
  0xc1   : > { %v712_v5 = vsub.f32 %v703_v0, %v711_v4 }
  0xc3   : > { %v713_v6 = vmul.f32 %v712_v5, %v712_v5 }
  0xc5   : > { %v714_v7 = vsel %vm706_vm0, %v713_v6, 0.0 }
  0xc6   : > { %715 = vadd.xlane.f32.xlu0 %v714_v7 }
 0x14f   : > { %v716_v8 = vpop.xlane.xlu0 %715 }
 0x150   : > { %v717_v9 = vmul.f32 0.03125, %v716_v8 }
 0x152   : > { %v718_v10 = vadd.f32 1e-05, %v717_v9 }
 0x154   : > { %1816 = vrsqrt.f32 %v718_v10 }
 0x161   : > { %v1817_v11 = vpop.eup %1816 }
 0x162   : > { %v720_v13 = vmul.f32 %v1817_v11, %v712_v5 }
 0x164   : > { %v727_v15 = vmul.f32 %v1595_v12, %v720_v13 }
 0x166   : > { %v734_v16 = vadd.f32 %v1596_v14, %v727_v15 }
 0x168   : > { %v735_v17 = vpack.c.bf16 %v734_v16, %v734_v16 }
 0x16a   : > { %737 = vst.msk [vmem:[#allocation2] sm:$0xf] %vm736_vm1, %v735_v17 }
 0x16b PF: > { %743 = sbr.rel (!%p699_p0) target bundleno = 675 (0x2a3), region = 96  ;;  %v744_v18 = vld [vmem:[%s2125_s17] sm:$0xff] (%p699_p0)  ;;  %vm747_vm2 = vcmask (%p699_p0), 261120   ;;  %vm777_vm3 = vcmask (%p699_p0), 257024  }
 0x16c   : > { %v748_v19 = vsel (%p699_p0), %vm747_vm2, %v744_v18, 0.0  ;;  %v1598_v29 = vld [vmem:[%s2321_s2] ss:$0 sm:$0xff] (%p699_p0) }
 0x16d   : > { %749 = vadd.xlane.f32.xlu0 (%p699_p0), %v748_v19  ;;  %v1599_v31 = vld [vmem:[%s2322_s3] ss:$0 sm:$0xff] (%p699_p0) }
 0x1f6   : > { %v750_v20 = vpop.xlane.xlu0 %749 }
 0x1f7   : > { %v752_v21 = vmul.f32 0.03125, %v750_v20 }
 0x1f9   : > { %v753_v22 = vsub.f32 %v744_v18, %v752_v21 }
 0x1fb   : > { %v754_v23 = vmul.f32 %v753_v22, %v753_v22 }
 0x1fd   : > { %v755_v24 = vsel %vm747_vm2, %v754_v23, 0.0 }
 0x1fe   : > { %756 = vadd.xlane.f32.xlu0 %v755_v24 }
 0x287   : > { %v757_v25 = vpop.xlane.xlu0 %756 }
 0x288   : > { %v758_v26 = vmul.f32 0.03125, %v757_v25 }
 0x28a   : > { %v759_v27 = vadd.f32 1e-05, %v758_v26 }
 0x28c   : > { %1818 = vrsqrt.f32 %v759_v27 }
 0x299   : > { %v1819_v28 = vpop.eup %1818 }
 0x29a   : > { %v761_v30 = vmul.f32 %v1819_v28, %v753_v22 }
 0x29c   : > { %v768_v32 = vmul.f32 %v1598_v29, %v761_v30 }
 0x29e   : > { %v775_v33 = vadd.f32 %v1599_v31, %v768_v32 }
 0x2a0   : > { %v776_v34 = vpack.c.bf16 %v775_v33, %v775_v33 }
 0x2a2   : > { %778 = vst.msk [vmem:[#allocation3] sm:$0xf] %vm777_vm3, %v776_v34 }
 0x2a3 PF: > { %v1820_v35 = vld [vmem:[%s2140_s26 + $0x8] sm:$0xff]   ;;  %v1941_v36 = vmov 0.0   ;;  %v1821_v37 = vld [vmem:[%s2140_s26] sm:$0xff]   ;;  %vm1942_vm4 = vmmov 0   ;;  %vm799_vm5 = vcmask 261120   ;;  %s1603_s26 = sshll.u32 %s1922_s27, 2 }
 0x2a4   : > { %1670 = vmatprep.subr.bf16.mxu0 %v1941_v36  ;;  %1678 = vmatprep.subr.bf16.mxu1 %v1941_v36  ;;  %v1824_v38 = vld [vmem:[%s2145_s24 + $0x8] sm:$0xff]   ;;  %v1823_v41 = vld [vmem:[%s2135_s12] sm:$0xff]   ;;  %vm846_vm6 = vcmask 60416   ;;  %vm988_vm7 = vcmask 64512   ;;  %s913_s16 = scalar_lea.vmem [#allocation5], %s1603_s26  ;;  %vm1053_vm8 = vcmask 1043456  }
 0x2a5   : > { %1671 = vmatpush3.bf16.msra.mxu0 %v1820_v35  ;;  %1674 = vmatprep.mubr.msk.bf16.mxu0 %vm1942_vm4, %v1941_v36  ;;  %v1822_v40 = vld [vmem:[%s2135_s12 + $0x8] sm:$0xff]   ;;  %v915_v42 = vld [vmem:[#allocation2] sm:$0xf]  ;;  %s845_s12 = scalar_lea.vmem [#allocation4], %s1603_s26  ;;  %p1618_p2 = scmp.ne.s32.totalorder %s1922_s27, 3 }
 0x2a6   : > { %1672 = vmatprep.subr.bf16.mxu0 %v1941_v36  ;;  %1682 = vmatprep.mubr.msk.bf16.mxu1 %vm1942_vm4, %v1941_v36  ;;  %v1825_v43 = vld [vmem:[%s2145_s24] sm:$0xff]   ;;  %s2376_s24 = scalar_lea.vmem %s2324_s5, %s2115_s23  ;;  %v1097_v25 = vld [vmem:[#allocation6] sm:$0xff]  ;;  %s2377_s1 = sld [smem:[#allocation24_spill]] (!%p1618_p2) }
 0x2a7   : > { %1679 = vmatpush3.bf16.msra.mxu1 %v1824_v38  ;;  %v1609_v49 = vld [vmem:[%s2376_s24] ss:$0 sm:$0xff]  ;;  %s2378_s26 = sld [smem:[#allocation25_spill]] (!%p1618_p2) }
 0x2a8   : > { %1680 = vmatprep.subr.bf16.mxu1 %v1941_v36  ;;  %v1604_v59 = vld [vmem:[%s693_s25] ss:$0 sm:$0xff]  ;;  %s2379_s28 = sld [smem:[#allocation27_spill]] (!%p1618_p2) }
 0x2a9   : > { %1673 = vmatpush3.bf16.msra.mxu0 %v1821_v37  ;;  %v782_v39 = vld [vmem:[#allocation3] sm:$0xf]  ;;  %v1099_v14 = vld [vmem:[%s2155_s14] sm:$0xf]  ;;  %s2381_s19 = sld [smem:[#allocation26_spill]] (!%p1618_p2) }
 0x2aa   : > { %1686 = vmatprep.subr.bf16.mxu0 %v1941_v36  ;;  %v1104_v15 = vsel %vm1053_vm8, %v1099_v14, 0  ;;  %s2382_s11 = sld [smem:[#allocation28_spill]] (!%p1618_p2) }
 0x2ab   : > { %1681 = vmatpush3.bf16.msra.mxu1 %v1825_v43 }
 0x2ac   : > { %1675 = vmatmul.mubr.msk.bf16.vlgmr.msra.gmra.mxu0 %vm799_vm5, %v782_v39  ;;  %1694 = vmatprep.subr.bf16.mxu1 %v1941_v36 }
 0x2ad   : > { %1687 = vmatpush3.bf16.msra.mxu0 %v1822_v40  ;;  %1690 = vmatprep.mubr.msk.bf16.mxu0 %vm1942_vm4, %v1941_v36 }
 0x2ae   : > { %1688 = vmatprep.subr.bf16.mxu0 %v1941_v36  ;;  %1683 = vmatmul.mubr.msk.bf16.vlgmr.msra.gmra.mxu1 %vm799_vm5, %v782_v39  ;;  %s2380_s18 = smov (!%p1618_p2), %s2379_s28 }
 0x2af   : > { %1696 = vmatprep.mubr.msk.bf16.mxu1 %vm1942_vm4, %v1941_v36 }
 0x2b1   : > { %1689 = vmatpush3.bf16.msra.mxu0 %v1823_v41 }
 0x2b2   : > { %1700 = vmatprep.subr.bf16.mxu0 %v1941_v36 }
 0x2b4   : > { %1691 = vmatmul.mubr.msk.bf16.vlgmr.msra.gmra.mxu0 %vm799_vm5, %v915_v42 }
 0x2b5   : > { %1702 = vmatprep.mubr.msk.bf16.mxu0 %vm1942_vm4, %v1941_v36 }
 0x36c   : > { %v837_v44 = vpop.f32.mrf.mxu0 }
 0x36d   : > { %v843_v45 = vpack.c.bf16 %v837_v44, %v837_v44 }
 0x36e   : > { %v1676_v46 = vpop.f32.mrf.mxu0  ;;  %v905_v60 = vpop.f32.mrf.mxu1 }
 0x36f   : > { %847 = vst.msk [vmem:[%s845_s12] sm:$0xf] %vm846_vm6, %v843_v45  ;;  %v906_v61 = vadd.f32 %v1604_v59, %v905_v60 }
 0x370   : > { %v840_v47 = vpop.f32.mrf.mxu0  ;;  %v1684_v62 = vpop.f32.mrf.mxu1 }
 0x371   : > { %v911_v63 = vpack.c.bf16 %v906_v61, %v906_v61 }
 0x372   : > { %v1677_v48 = vpop.f32.mrf.mxu0  ;;  %v908_v0 = vpop.f32.mrf.mxu1 }
 0x373   : > { %914 = vst.msk [vmem:[%s913_s16] sm:$0xf] %vm846_vm6, %v911_v63 }
 0x374   : > { %v977_v50 = vpop.f32.mrf.mxu0  ;;  %v1685_v1 = vpop.f32.mrf.mxu1 }
 0x375   : > { %v978_v51 = vadd.f32 %v1609_v49, %v977_v50 }
 0x376   : > { %v1692_v52 = vpop.f32.mrf.mxu0  ;;  %v987_v53 = vld [vmem:[%s845_s12] sm:$0xf] }
 0x377   : > { %v983_v54 = vmul.f32 0.35355338, %v978_v51  ;;  %v993_v55 = vsel %vm988_vm7, %v987_v53, 0 }
 0x378   : > { %v980_v56 = vpop.f32.mrf.mxu0  ;;  %1695 = vmatpush3.bf16.xpose.msra.mxu1 %v993_v55 }
 0x379   : > { %1706 = vmatprep.subr.bf16.mxu1 %v1941_v36  ;;  %v984_v58 = vpack.c.bf16 %v983_v54, %v983_v54 }
 0x37a   : > { %v1693_v57 = vpop.f32.mrf.mxu0  ;;  %v1049_v2 = vld [vmem:[%s913_s16] sm:$0xf] }
 0x37b   : > { %v1055_v3 = vsel %vm1053_vm8, %v1049_v2, 0 }
 0x37c   : > { %1701 = vmatpush3.bf16.msra.mxu0 %v1055_v3 }
 0x37f   : > { %1697 = vmatmul.mubr.msk.bf16.vlgmr.msra.gmra.mxu1 %vm988_vm7, %v984_v58 }
 0x380   : > { %1708 = vmatprep.mubr.msk.bf16.mxu1 %vm1942_vm4, %v1941_v36  ;;  %1707 = vmatpush3.bf16.msra.mxu1 %v1104_v15 }
 0x43f   : > { %v1029_v4 = vpop.f32.mrf.mxu1 }
 0x440   : > { %v1035_v5 = vsel %vm988_vm7, %v1029_v4, -inf }
 0x441   : > { %1036 = vmax.xlane.f32.xlu0 %v1035_v5  ;;  %v1698_v6 = vpop.f32.mrf.mxu1 }
 0x443   : > { %v1032_v7 = vpop.f32.mrf.mxu1 }
 0x445   : > { %v1699_v8 = vpop.f32.mrf.mxu1 }
 0x4ca   : > { %v1037_v9 = vpop.xlane.xlu0 %1036 }
 0x4cb   : > { %v1038_v10 = vsub.f32 %v1029_v4, %v1037_v9 }
 0x4cd   : > { %v1039_v11 = vmul.f32 1.442695, %v1038_v10 }
 0x4cf   : > { %1826 = vpow2.f32 %v1039_v11 }
 0x4dc   : > { %v1827_v12 = vpop.eup %1826 }
 0x4dd   : > { %v1041_v13 = vsel %vm988_vm7, %v1827_v12, 0.0 }
 0x4de   : > { %1042 = vadd.xlane.f32.xlu0 %v1041_v13 }
 0x567   : > { %v1043_v16 = vpop.xlane.xlu0 %1042 }
 0x568   : > { %1828 = vrcp.f32 %v1043_v16 }
 0x575   : > { %v1829_v17 = vpop.eup %1828 }
 0x576   : > { %v1045_v18 = vmul.f32 %v1829_v17, %v1827_v12 }
 0x578   : > { %v1046_v19 = vpack.c.bf16 %v1045_v18, %v1045_v18 }
 0x57a   : > { %1703 = vmatmul.mubr.msk.bf16.vlgmr.msra.gmra.mxu0 %vm988_vm7, %v1046_v19 }
 0x63a   : > { %v1091_v20 = vpop.f32.mrf.mxu0 }
 0x63b   : > { %v1098_v21 = vpack.c.bf16 %v1091_v20, %v1091_v20 }
 0x63c   : > { %v1704_v22 = vpop.f32.mrf.mxu0 }
 0x63d   : > { %1709 = vmatmul.mubr.msk.bf16.vlgmr.msra.gmra.mxu1 %vm988_vm7, %v1098_v21 }
 0x63e   : > { %v1094_v23 = vpop.f32.mrf.mxu0 }
 0x640   : > { %v1705_v24 = vpop.f32.mrf.mxu0 }
 0x6fd   : > { %v1140_v26 = vpop.f32.mrf.mxu1 }
 0x6fe   : > { %v1146_v27 = vadd.f32 %v1140_v26, %v1097_v25 }
 0x6ff   : > { %v1710_v28 = vpop.f32.mrf.mxu1  ;;  %1151 = sbr.rel (%p1618_p2) target bundleno = 2561 (0xa01), region = 104 }
 0x700   : > { %1147 = vst.msk [vmem:[#allocation6] sm:$0xff] %vm799_vm5, %v1146_v27 }
 0x701   : > { %v1143_v29 = vpop.f32.mrf.mxu1 }
 0x703   : > { %v1711_v30 = vpop.f32.mrf.mxu1 }
 0x704   : > { %v1152_v31 = vld [vmem:[%s2120_s22] sm:$0xff]  ;;  %v1830_v42 = vld [vmem:[%s2332_s13 + $0x8] sm:$0xff]   ;;  %v1943_v43 = vmov 0.0   ;;  %vm1944_vm9 = vmmov 0   ;;  %v1832_v55 = vld [vmem:[%s2379_s28 + $0x38] sm:$0xff]  }
 0x705   : > { %v1619_v33 = vld [vmem:[%s2329_s10] ss:$0 sm:$0xff]  ;;  %1712 = vmatprep.subr.bf16.mxu0 %v1943_v43  ;;  %1716 = vmatprep.mubr.msk.bf16.mxu0 %vm1944_vm9, %v1943_v43  ;;  %v1833_v56 = vld [vmem:[%s2380_s18 + $0x30] sm:$0xff]   ;;  %v1834_v57 = vld [vmem:[%s2380_s18 + $0x28] sm:$0xff]  }
 0x706   : > { %1713 = vmatpush3.bf16.msra.mxu0 %v1830_v42  ;;  %v1831_v44 = vld [vmem:[%s2332_s13] sm:$0xff]   ;;  %1720 = vmatprep.subr.bf16.mxu1 %v1943_v43  ;;  %v1836_v59 = vld [vmem:[%s2380_s18 + $0x18] sm:$0xff]   ;;  %v1837_v60 = vld [vmem:[%s2380_s18 + $0x10] sm:$0xff]  }
 0x707   : > { %v1153_v32 = vld [vmem:[#allocation6] sm:$0xff]  ;;  %1714 = vmatprep.subr.bf16.mxu0 %v1943_v43  ;;  %1736 = vmatprep.mubr.msk.bf16.mxu1 %vm1944_vm9, %v1943_v43  ;;  %v1620_v49 = vld [vmem:[%s2377_s1] ss:$0 sm:$0xff] }
 0x708   : > { %v1154_v34 = vadd.f32 %v1153_v32, %v1152_v31  ;;  %v1621_v51 = vld [vmem:[%s2378_s26] ss:$0 sm:$0xff]  ;;  %1721 = vmatpush3.bf16.msra.mxu1 %v1832_v55  ;;  %v1838_v61 = vld [vmem:[%s2380_s18 + $0x8] sm:$0xff]  }
 0x709   : > { %1722 = vmatprep.subr.bf16.mxu1 %v1943_v43  ;;  %v1835_v58 = vld [vmem:[%s2380_s18 + $0x20] sm:$0xff]  }
 0x70a   : > { %v2218_v35 = vadd.f32 %v1619_v33, %v1154_v34  ;;  %1715 = vmatpush3.bf16.msra.mxu0 %v1831_v44  ;;  %v1839_v62 = vld [vmem:[%s2380_s18] sm:$0xff]  }
 0x70b   : > { %v1622_v63 = vld [vmem:[%s2381_s19] ss:$0 sm:$0xff] }
 0x70c   : > { %v1165_v36 = vsel %vm799_vm5, %v2218_v35, 0.0  ;;  %1723 = vmatpush3.bf16.msra.mxu1 %v1833_v56  ;;  %v1626_v31 = vld [vmem:[%s2382_s11] ss:$0 sm:$0xff] }
 0x70d   : > { %1166 = vadd.xlane.f32.xlu0 %v1165_v36  ;;  %1724 = vmatprep.subr.bf16.mxu1 %v1943_v43 }
 0x710   : > { %1725 = vmatpush3.bf16.msra.mxu1 %v1834_v57 }
 0x711   : > { %1726 = vmatprep.subr.bf16.mxu1 %v1943_v43 }
 0x714   : > { %1727 = vmatpush3.bf16.msra.mxu1 %v1835_v58 }
 0x715   : > { %1728 = vmatprep.subr.bf16.mxu1 %v1943_v43 }
 0x718   : > { %1729 = vmatpush3.bf16.msra.mxu1 %v1836_v59 }
 0x719   : > { %1730 = vmatprep.subr.bf16.mxu1 %v1943_v43 }
 0x71c   : > { %1731 = vmatpush3.bf16.msra.mxu1 %v1837_v60 }
 0x71d   : > { %1732 = vmatprep.subr.bf16.mxu1 %v1943_v43 }
 0x720   : > { %1733 = vmatpush3.bf16.msra.mxu1 %v1838_v61 }
 0x721   : > { %1734 = vmatprep.subr.bf16.mxu1 %v1943_v43 }
 0x724   : > { %1735 = vmatpush3.bf16.msra.mxu1 %v1839_v62 }
 0x796   : > { %v1167_v37 = vpop.xlane.xlu0 %1166 }
 0x797   : > { %v1169_v38 = vmul.f32 0.03125, %v1167_v37 }
 0x799   : > { %v1170_v39 = vsub.f32 %v2218_v35, %v1169_v38 }
 0x79b   : > { %v1171_v40 = vmul.f32 %v1170_v39, %v1170_v39 }
 0x79d   : > { %v1172_v41 = vsel %vm799_vm5, %v1171_v40, 0.0 }
 0x79e   : > { %1173 = vadd.xlane.f32.xlu0 %v1172_v41 }
 0x827   : > { %v1174_v45 = vpop.xlane.xlu0 %1173 }
 0x828   : > { %v1175_v46 = vmul.f32 0.03125, %v1174_v45 }
 0x82a   : > { %v1176_v47 = vadd.f32 1e-05, %v1175_v46 }
 0x82c   : > { %1840 = vrsqrt.f32 %v1176_v47 }
 0x839   : > { %v1841_v48 = vpop.eup %1840 }
 0x83a   : > { %v1178_v50 = vmul.f32 %v1841_v48, %v1170_v39 }
 0x83c   : > { %v1185_v52 = vmul.f32 %v1620_v49, %v1178_v50 }
 0x83e   : > { %v1192_v53 = vadd.f32 %v1621_v51, %v1185_v52 }
 0x840   : > { %v1193_v54 = vpack.c.bf16 %v1192_v53, %v1192_v53 }
 0x842   : > { %1717 = vmatmul.mubr.msk.bf16.vlgmr.msra.gmra.mxu0 %vm799_vm5, %v1193_v54 }
 0x902   : > { %v1254_v0 = vpop.f32.mrf.mxu0 }
 0x903   : > { %v1255_v1 = vadd.f32 %v1622_v63, %v1254_v0 }
 0x904   : > { %v1718_v2 = vpop.f32.mrf.mxu0 }
 0x905   : > { %v1261_v3 = vmul.f32 0.70710677, %v1255_v1  ;;  %v1260_v27 = vmul.f32 0.5, %v1255_v1 }
 0x906   : > { %v1257_v4 = vpop.f32.mrf.mxu0 }
 0x907   : > { %v1262_v5 = vand.u32 2147483647, %v1261_v3  ;;  %vm1282_vm10 = vcmp.ge.f32.partialorder %v1261_v3, 0.0 }
 0x908   : > { %v1719_v6 = vpop.f32.mrf.mxu0 }
 0x909   : > { %v1263_v7 = vmul.f32 0.3275911, %v1262_v5  ;;  %v1276_v9 = vsub.f32 0.0, %v1262_v5 }
 0x90b   : > { %v1264_v8 = vadd.f32 1.0, %v1263_v7  ;;  %v1277_v10 = vmul.f32 %v1276_v9, %v1262_v5 }
 0x90d   : > { %1842 = vrcp.f32 %v1264_v8  ;;  %v1278_v12 = vmul.f32 1.442695, %v1277_v10 }
 0x90f   : > { %1844 = vpow2.f32 %v1278_v12 }
 0x91a   : > { %v1843_v11 = vpop.eup %1842 }
 0x91b   : > { %v1267_v13 = vmul.f32 1.0614054, %v1843_v11 }
 0x91c   : > { %v1845_v22 = vpop.eup %1844 }
 0x91d   : > { %v1268_v14 = vadd.f32 -1.4531521, %v1267_v13 }
 0x91f   : > { %v1269_v15 = vmul.f32 %v1843_v11, %v1268_v14 }
 0x921   : > { %v1270_v16 = vadd.f32 1.4214138, %v1269_v15 }
 0x923   : > { %v1271_v17 = vmul.f32 %v1843_v11, %v1270_v16 }
 0x925   : > { %v1272_v18 = vadd.f32 -0.28449672, %v1271_v17 }
 0x927   : > { %v1273_v19 = vmul.f32 %v1843_v11, %v1272_v18 }
 0x929   : > { %v1274_v20 = vadd.f32 0.2548296, %v1273_v19 }
 0x92b   : > { %v1275_v21 = vmul.f32 %v1843_v11, %v1274_v20 }
 0x92d   : > { %v1280_v23 = vmul.f32 %v1845_v22, %v1275_v21 }
 0x92f   : > { %v1281_v24 = vsub.f32 1.0, %v1280_v23 }
 0x931   : > { %v1283_v25 = vsub.f32 0.0, %v1281_v24 }
 0x933   : > { %v1284_v26 = vsel %vm1282_vm10, %v1281_v24, %v1283_v25 }
 0x934   : > { %v1285_v28 = vadd.f32 1.0, %v1284_v26 }
 0x936   : > { %v1286_v29 = vmul.f32 %v1285_v28, %v1260_v27 }
 0x938   : > { %v1287_v30 = vpack.c.bf16 %v1286_v29, %v1286_v29 }
 0x93a   : > { %1737 = vmatmul.mubr.bf16.vlgmr.msra.gmra.mxu1 %v1287_v30 }
 0x9fa   : > { %v1393_v32 = vpop.f32.mrf.mxu1 }
 0x9fb   : > { %v1394_v33 = vadd.f32 %v1626_v31, %v1393_v32 }
 0x9fc   : > { %v1738_v34 = vpop.f32.mrf.mxu1 }
 0x9fd   : > { %v1399_v36 = vadd.f32 %v1394_v33, %v2218_v35 }
 0x9fe   : > { %v1396_v37 = vpop.f32.mrf.mxu1 }
 0x9ff   : > { %1400 = vst.msk [vmem:[%s661_s15] sm:$0xff] %vm799_vm5, %v1399_v36 }
 0xa00   : > { %v1739_v38 = vpop.f32.mrf.mxu1 }
 0xa01 PF: > { %s2383_s16 = sld [smem:[#allocation13_spill]]  ;;  %s1416_s0 = sshll.u32 %s661_s15, 4  ;;  %s1417_s0 = int_to_ptr.vmem [resolvable:$true] %s1416_s0 }
 0xa02   : > { %s2384_s23 = sld [smem:[#allocation11_spill]]  ;;  %s1846_s30 = scalar_lea.vmem %s1417_s0, 128 }
 0xa03   : > { %s2386_s21 = sld [smem:[#allocation29_spill]]  ;;  %p1847_p4 = scmp.ne.s32.totalorder %s1417_s0, %s1846_s30 }
 0xa04   : > { %s1945_s26 = smov [#allocation7]  }
 0xa05   : > { %p1848_p5 = pnand %p1847_p4, %p2085_p3  ;;  %s1850_s12 = sshll.u32 %s1945_s26, 4  ;;  %s1851_s12 = int_to_ptr.vmem [resolvable:$false] %s1850_s12 }
 0xa06   : > { %s1852_s19 = scalar_lea.vmem %s1851_s12, 256  ;;  %p1853_p7 = scmp.lt.s32.totalorder %s1417_s0, %s1851_s12 }
 0xa07   : > { %s1636_s27 = sshll.u32 %s2383_s16, 7  ;;  %p1849_p6 = pneg %p1848_p5 }
 0xa08   : > { %s2387_s1 = sand.u32 1, %s2384_s23   ;;  %p1854_p8 = scmp.lt.s32.totalorder %s1852_s19, %s1846_s30 }
 0xa09   : > { %s1414_s20 = scalar_lea.hbm %s2386_s21, %s1636_s27  ;;  %s1402_s17 = scalar_lea.sflag [#allocation8], %s2387_s1 }
 0xa0a   : > { %p1855_p10 = por %p1854_p8, %p1853_p7 }
 0xa0c   : > { %p1856_p11 = pnand %p1855_p10, %p1849_p6 }
 0xa0e   : > { %1859 = shalt.err (!%p1856_p11)
}
 0xa0f   : > { %s1860_s28 = scalar_lea.hbm %s1414_s20, 128  ;;  %s1864_s24 = scalar_lea.hbm %s2386_s21, 256 }
 0xa10   : > { %p1861_p12 = scmp.ne.s32.totalorder %s1414_s20, %s1860_s28  ;;  %p1865_p1 = scmp.lt.s32.totalorder %s1414_s20, %s2386_s21 }
 0xa11   : > { %p1866_p2 = scmp.lt.s32.totalorder %s1864_s24, %s1860_s28 }
 0xa12   : > { %p1862_p13 = pnand %p1861_p12, %p2085_p3 }
 0xa13   : > { %p1867_p4 = por %p1866_p2, %p1865_p1 }
 0xa14   : > { %p1863_p0 = pneg %p1862_p13 }
 0xa16   : > { %p1868_p5 = pnand %p1867_p4, %p1863_p0 }
 0xa18   : > { %1871 = shalt.err (!%p1868_p5)
}
 0xa19   : > { %1740 = dma.vmem_to_hbm [thread:$0]  (%p2085_p3), %s1417_s0, 128, %s1414_s20, %s1402_s17  }
 0xa1a PF: > { %s2388_s23 = sld [smem:[#allocation16_spill]] }
 0xa1b   : > { %s2389_s27 = sld [smem:[#allocation10_spill]] }
 0xa20   : > { %p1746_p6 = scmp.ge.s32.totalorder %s2388_s23, 2 }
 0xa21   : > { %s1428_s14 = sand.u32 1, %s2389_s27  }
 0xa22   : > { %p1743_p7 = pnand %p1746_p6, %p2095_p9  ;;  %s1429_s1 = scalar_lea.sflag [#allocation8], %s1428_s14 }
 0xa24   : > { %p1744_p8 = pneg %p1743_p7 }
 0xa26   : > { %1905 = dma.done.wait (%p1744_p8), %s1429_s1, 128  }
 0xa27   : > { %1907 = vsyncadd (%p1744_p8), %s1429_s1, 4294967168  ;;  %s30_s30 = sadd.s32 1, %s2388_s23   ;;  %s2391_s24 = sld [smem:[#allocation11_spill]] }
 0xa28   : > { %p27_p10 = scmp.ge.s32.totalorder %s30_s30, 10   ;;  %s2392_s25 = sld [smem:[#allocation12_spill]] }
 0xa29   : > { %s2393_s26 = sld [smem:[#allocation21_spill]] }
 0xa2a   : > { %s2394_s27 = sld [smem:[#allocation14_spill]]  ;;  %29 = sbr.rel (!%p27_p10) target bundleno = 14 (0xe), region = 164 }
 0xa2b   : > { %s2395_s28 = sld [smem:[#allocation15_spill]] }
 0xa2c   : > { %s2396_s29 = sld [smem:[#allocation17_spill]] }
 0xa2d   : > { %s2397_s0 = sld [smem:[#allocation19_spill]] }
 0xa2f   :  { %1434 = vsyncpa [#allocation8], 1 }
 0xa30   :  { %1436 = vsyncpa [#allocation8 + $0x1], 1 }

</bundles_post_ra>
